<compile_context>
chip_gen: v6e
topology: v6e:2x2x1
jax: 0.10.0
libtpu: 0.0.40
codegen_flags: <defaults>
</compile_context>

<pallas_src>
import jax
import jax.numpy as jnp
from jax.experimental import pallas as pl
from jax.experimental.pallas import tpu as pltpu

LATENT_DIM = 256   # matches the module-level constant in NST.py
OUTPUT_DIM = 128   # output dim (multiple of 128 for lane-dense stores)


def generator_kernel(x_ref, w_ref, b_ref, o_ref):
    # x_ref: (TB, K)  w_ref: (K, N)  b_ref: (1, N)  o_ref: (TB, N)
    # MXU matmul with f32 accumulation (operands may be f32 or bf16).
    y = jnp.dot(x_ref[...], w_ref[...], preferred_element_type=jnp.float32)
    y = y + b_ref[...]                    # bias broadcast over batch rows (VPU, f32)
    y = jnp.maximum(y, 0.0)               # ReLU (VPU)
    o_ref[...] = jnp.tanh(y).astype(o_ref.dtype)   # Tanh (EUP)


def generator_forward(x, w_t, b, *, tile_b=512, use_bf16_matmul=False):
    """x: (B, latent_dim); w_t: (latent_dim, output_dim); b: (output_dim,).

    Returns f32 (B, output_dim) = tanh(relu(x @ w_t + b)).
    """
    B, K = x.shape
    _, N = w_t.shape

    if use_bf16_matmul:
        # Halve HBM bytes for the dominant x read (kernel is memory-bound).
        x_in = x.astype(jnp.bfloat16)
        w_in = w_t.astype(jnp.bfloat16)
    else:
        x_in, w_in = x, w_t
    b2 = b.reshape(1, N).astype(jnp.float32)   # keep bias 2D and in f32

    # Batch tile: as large as useful, capped at B. When tiling, keep the
    # sublane dim a multiple of 8; pl.cdiv handles the last partial tile.
    tb = min(tile_b, B)
    if tb != B:
        tb = max(8, (tb // 8) * 8)
    grid = (pl.cdiv(B, tb),)

    bytes_in = (x_in.dtype.itemsize * B * K
                + w_in.dtype.itemsize * K * N
                + 4 * N)
    cost = pl.CostEstimate(
        flops=2 * B * K * N,
        transcendentals=B * N,                 # tanh
        bytes_accessed=bytes_in + 4 * B * N,   # + f32 output
    )

    return pl.pallas_call(
        generator_kernel,
        out_shape=jax.ShapeDtypeStruct((B, N), jnp.float32),
        grid_spec=pltpu.PrefetchScalarGridSpec(
            num_scalar_prefetch=0,
            grid=grid,
            in_specs=[
                # x tile: streamed over the batch axis (double-buffered).
                pl.BlockSpec((tb, K), lambda i: (i, 0)),
                # weight / bias are grid-invariant -> single-buffer them.
                pl.BlockSpec((K, N), lambda i: (0, 0),
                             pipeline_mode=pl.Buffered(1)),
                pl.BlockSpec((1, N), lambda i: (0, 0),
                             pipeline_mode=pl.Buffered(1)),
            ],
            out_specs=pl.BlockSpec((tb, N), lambda i: (i, 0)),
        ),
        compiler_params=pltpu.CompilerParams(
            dimension_semantics=("parallel",)),   # batch axis shards across TCs
        cost_estimate=cost,
    )(x_in, w_in, b2)


def reference_forward(x, w_t, b):
    return jnp.tanh(jnp.maximum(x @ w_t + b[None, :], 0.0))


if __name__ == "__main__":
    key = jax.random.PRNGKey(0)
    k_x, k_w, k_b, k_x2 = jax.random.split(key, 4)

    # Deterministic parameter init mimicking nn.Linear default (uniform ±1/sqrt(in)).
    bound = 1.0 / (LATENT_DIM ** 0.5)
    w = jax.random.uniform(k_w, (OUTPUT_DIM, LATENT_DIM), jnp.float32, -bound, bound)
    b = jax.random.uniform(k_b, (OUTPUT_DIM,), jnp.float32, -bound, bound)
    w_t = w.T  # (latent_dim, output_dim) for the kernel

    # --- small-batch check (single grid step, f32 path, tight tolerance) ---
    batch = 8
    x = jax.random.normal(k_x, (batch, LATENT_DIM), jnp.float32)
    out = jax.block_until_ready(generator_forward(x, w_t, b))
    ref = reference_forward(x, w_t, b)
    assert out.shape == (batch, OUTPUT_DIM)
    assert jnp.allclose(out, ref, atol=1e-5, rtol=1e-5), "f32 mismatch vs reference"

    # --- multi-tile check (exercises grid > 1 and megacore sharding) ---
    batch2 = 64
    x2 = jax.random.normal(k_x2, (batch2, LATENT_DIM), jnp.float32)
    out2 = jax.block_until_ready(generator_forward(x2, w_t, b, tile_b=32))
    ref2 = reference_forward(x2, w_t, b)
    assert out2.shape == (batch2, OUTPUT_DIM)
    assert jnp.allclose(out2, ref2, atol=1e-5, rtol=1e-5), "tiled f32 mismatch"

    # --- bf16-operand path (looser tolerance; accumulation still f32) ---
    out3 = jax.block_until_ready(
        generator_forward(x2, w_t, b, tile_b=32, use_bf16_matmul=True))
    assert jnp.allclose(out3, ref2, atol=2e-2, rtol=2e-2), "bf16 mismatch"

    print("KERNEL_OK")
</pallas_src>

<mosaic_0001>
module attributes {stable_mosaic.version = 11 : i64} {
  func.func @generator_kernel(%arg0: i32, %arg1: memref<8x256xf32, #tpu.memory_space<vmem>>, %arg2: memref<256x128xf32, #tpu.memory_space<vmem>>, %arg3: memref<1x128xf32, #tpu.memory_space<vmem>>, %arg4: memref<8x128xf32, #tpu.memory_space<vmem>>) attributes {dimension_semantics = [#tpu.dimension_semantics<parallel>], iteration_bounds = array<i64: 1>, scalar_prefetch = 0 : i64, scratch_operands = 0 : i64, tpu.core_type = #tpu.core_type<tc>, window_params = [{transform_indices = @transform_0, window_bounds = array<i64: 8, 256>}, {pipeline_mode = #tpu.pipeline_mode<synchronous>, transform_indices = @transform_1, window_bounds = array<i64: 256, 128>}, {pipeline_mode = #tpu.pipeline_mode<synchronous>, transform_indices = @transform_2, window_bounds = array<i64: 1, 128>}, {transform_indices = @transform_3, window_bounds = array<i64: 8, 128>}]} {
    %c0 = arith.constant 0 : index
    %c0_0 = arith.constant 0 : index
    %0 = vector.load %arg1[%c0, %c0_0] : memref<8x256xf32, #tpu.memory_space<vmem>>, vector<8x256xf32>
    %c0_1 = arith.constant 0 : index
    %c0_2 = arith.constant 0 : index
    %1 = vector.load %arg2[%c0_1, %c0_2] : memref<256x128xf32, #tpu.memory_space<vmem>>, vector<256x128xf32>
    %cst = arith.constant dense<0.000000e+00> : vector<8x128xf32>
    %2 = tpu.matmul %0, %1, %cst {dimension_numbers = #tpu.dot_dimension_numbers<[1], [0], [0], [1], [0, 0, 1, 1], [], []>} : vector<8x256xf32>, vector<256x128xf32>, vector<8x128xf32> -> vector<8x128xf32>
    %c0_3 = arith.constant 0 : index
    %c0_4 = arith.constant 0 : index
    %3 = vector.load %arg3[%c0_3, %c0_4] : memref<1x128xf32, #tpu.memory_space<vmem>>, vector<1x128xf32>
    %4 = vector.broadcast %3 : vector<1x128xf32> to vector<8x128xf32>
    %5 = arith.addf %2, %4 : vector<8x128xf32>
    %cst_5 = arith.constant 0.000000e+00 : f32
    %6 = vector.broadcast %cst_5 : f32 to vector<8x128xf32>
    %7 = arith.maximumf %5, %6 : vector<8x128xf32>
    %8 = math.tanh %7 : vector<8x128xf32>
    %c0_6 = arith.constant 0 : index
    %c0_7 = arith.constant 0 : index
    %9 = vector.load %arg4[%c0_6, %c0_7] : memref<8x128xf32, #tpu.memory_space<vmem>>, vector<8x128xf32>
    tpu.vector_store %arg4[%c0_6, %c0_7], %8 {strides = array<i32>} : memref<8x128xf32, #tpu.memory_space<vmem>>, vector<8x128xf32>,
    return
  }
  func.func @transform_0(%arg0: i32) -> (i32, i32) {
    %c0_i32 = arith.constant 0 : i32
    %c0_i32_0 = arith.constant 0 : i32
    return %arg0, %c0_i32 : i32, i32
  }
  func.func @transform_1(%arg0: i32) -> (i32, i32) {
    %c0_i32 = arith.constant 0 : i32
    %c0_i32_0 = arith.constant 0 : i32
    %c0_i32_1 = arith.constant 0 : i32
    return %c0_i32, %c0_i32_0 : i32, i32
  }
  func.func @transform_2(%arg0: i32) -> (i32, i32) {
    %c0_i32 = arith.constant 0 : i32
    %c0_i32_0 = arith.constant 0 : i32
    %c0_i32_1 = arith.constant 0 : i32
    return %c0_i32, %c0_i32_0 : i32, i32
  }
  func.func @transform_3(%arg0: i32) -> (i32, i32) {
    %c0_i32 = arith.constant 0 : i32
    %c0_i32_0 = arith.constant 0 : i32
    return %arg0, %c0_i32 : i32, i32
  }
}

</mosaic_0001>

<bundles_post_ra>
// kernel: tpu_custom_call.1
= control target key start
LH: loop header
LB: loop body
LE: loop exit
PB: predicated region body
PF: predicated region fallthrough
CT: control target
= control target key end

     0   :  { %8 = vsyncpa [#allocation3], 0  ;;  %s317_s0 = inlined_call_operand.hbm [shape: f32[8,256], index: 0, kind: input, shape index: {}]   ;;  %s318_s1 = inlined_call_operand.hbm [shape: f32[256,128], index: 1, kind: input, shape index: {}]   ;;  %s319_s2 = inlined_call_operand.vmem [shape: f32[1,128], index: 2, kind: input, shape index: {}]   ;;  %s320_s3 = inlined_call_operand.hbm [shape: f32[8,128], index: 3, kind: output, shape index: {}]  }
   0x1   :  { %9 = vsyncpa [#allocation6], 0 }
   0x2   :  { %10 = vsyncpa [#allocation4], 0  ;;  %s280_s12 = smov [#allocation2]   ;;  %s281_s14 = smov [#allocation5]  }
   0x3   :  { %s17_s13 = sshll.u32 %s280_s12, 4  ;;  %s26_s15 = sshll.u32 %s281_s14, 4  ;;  %s18_s13 = int_to_ptr.vmem [resolvable:$true] %s17_s13  ;;  %s27_s15 = int_to_ptr.vmem [resolvable:$true] %s26_s15 }
   0x4   :  { %s222_s16 = scalar_lea.vmem %s18_s13, 256  ;;  %p227_p1 = scmp.lt.s32.totalorder %s18_s13, %s18_s13 }
   0x5   :  { %p223_p0 = scmp.ne.s32.totalorder %s18_s13, %s222_s16  ;;  %p228_p2 = scmp.lt.s32.totalorder %s222_s16, %s222_s16 }
   0x7   :  { %p229_p3 = por %p228_p2, %p227_p1 }
   0x9   :  { %p230_p4 = pnand %p229_p3, %p223_p0 }
   0xb   :  { %233 = shalt.err (!%p230_p4)
}
   0xc   :  { %20 = dma.hbm_to_vmem [thread:$0]  %s317_s0, 256, %s18_s13, [#allocation3]  }
   0xd   :  { %s242_s19 = scalar_lea.vmem %s27_s15, 4096  ;;  %p247_p6 = scmp.lt.s32.totalorder %s27_s15, %s27_s15 }
   0xe   :  { %p243_p5 = scmp.ne.s32.totalorder %s27_s15, %s242_s19  ;;  %p248_p7 = scmp.lt.s32.totalorder %s242_s19, %s242_s19 }
  0x10   :  { %p249_p8 = por %p248_p7, %p247_p6 }
  0x12   :  { %p250_p9 = pnand %p249_p8, %p243_p5 }
  0x14   :  { %253 = shalt.err (!%p250_p9)
}
  0x15   :  { %s282_s20 = smov 128   ;;  %s283_s21 = smov 8  }
  0x16   :  { %32 = dma.hbm_to_vmem [thread:$0]  %s318_s1, 4096, %s27_s15, [#allocation6], %s282_s20, %s282_s20, %s283_s21  }
  0x17   :  { %274 = dma.done.wait [#allocation3], 256  }
  0x18   :  { %275 = vsyncadd [#allocation3], 4294967040 }
  0x19   :  { %276 = dma.done.wait [#allocation6], 4096  }
  0x1a   :  { %277 = vsyncadd [#allocation6], 4294963200  ;;  %v74_v0 = vld [vmem:[#allocation5 + $0xf8] sm:$0xff]  ;;  %v73_v2 = vld [vmem:[#allocation5 + $0xf0] sm:$0xff]  ;;  %s284_s24 = smov [#allocation7]  }
  0x1b   :  { %v58_v1 = vld [vmem:[#allocation5 + $0x78] sm:$0xff]  ;;  %172 = vmatprep.subr.mxu0 %v74_v0  ;;  %v57_v3 = vld [vmem:[#allocation5 + $0x70] sm:$0xff]  ;;  %v72_v4 = vld [vmem:[#allocation5 + $0xe8] sm:$0xff]  ;;  %s161_s25 = sshll.u32 %s284_s24, 4  ;;  %s162_s25 = int_to_ptr.vmem [resolvable:$true] %s161_s25 }
  0x1c   :  { %173 = vmatpush3.msra.mxu0 %v58_v1  ;;  %v56_v5 = vld [vmem:[#allocation5 + $0x68] sm:$0xff]  ;;  %v71_v6 = vld [vmem:[#allocation5 + $0xe0] sm:$0xff]  ;;  %v70_v8 = vld [vmem:[#allocation5 + $0xd8] sm:$0xff]  ;;  %s254_s26 = scalar_lea.vmem %s162_s25, 128  ;;  %p259_p11 = scmp.lt.s32.totalorder %s162_s25, %s162_s25 }
  0x1d   :  { %174 = vmatprep.subr.mxu0 %v73_v2  ;;  %v55_v7 = vld [vmem:[#allocation5 + $0x60] sm:$0xff]  ;;  %v54_v9 = vld [vmem:[#allocation5 + $0x58] sm:$0xff]  ;;  %v69_v10 = vld [vmem:[#allocation5 + $0xd0] sm:$0xff]  ;;  %p255_p10 = scmp.ne.s32.totalorder %s162_s25, %s254_s26  ;;  %p260_p12 = scmp.lt.s32.totalorder %s254_s26, %s254_s26 }
  0x1e   :  { %175 = vmatpush3.msra.mxu0 %v57_v3  ;;  %v53_v11 = vld [vmem:[#allocation5 + $0x50] sm:$0xff]  ;;  %v68_v12 = vld [vmem:[#allocation5 + $0xc8] sm:$0xff]  ;;  %v42_v13 = vld [vmem:[#allocation2 + $0x8] sm:$0xff] }
  0x1f   :  { %176 = vmatprep.subr.mxu0 %v72_v4  ;;  %v52_v14 = vld [vmem:[#allocation5 + $0x48] sm:$0xff]  ;;  %146 = vmatprep.mubr.f32.mxu0 %v42_v13  ;;  %v67_v15 = vld [vmem:[#allocation5 + $0xc0] sm:$0xff]  ;;  %v66_v17 = vld [vmem:[#allocation5 + $0xb8] sm:$0xff]  ;;  %p261_p13 = por %p260_p12, %p259_p11 }
  0x20   :  { %177 = vmatpush3.msra.mxu0 %v56_v5  ;;  %v51_v16 = vld [vmem:[#allocation5 + $0x40] sm:$0xff]  ;;  %v50_v18 = vld [vmem:[#allocation5 + $0x38] sm:$0xff]  ;;  %v65_v19 = vld [vmem:[#allocation5 + $0xb0] sm:$0xff] }
  0x21   :  { %178 = vmatprep.subr.mxu0 %v71_v6  ;;  %v49_v20 = vld [vmem:[#allocation5 + $0x30] sm:$0xff]  ;;  %v64_v21 = vld [vmem:[#allocation5 + $0xa8] sm:$0xff]  ;;  %v63_v23 = vld [vmem:[#allocation5 + $0xa0] sm:$0xff]  ;;  %p262_p0 = pnand %p261_p13, %p255_p10 }
  0x22   :  { %179 = vmatpush3.msra.mxu0 %v55_v7  ;;  %v48_v22 = vld [vmem:[#allocation5 + $0x28] sm:$0xff]  ;;  %v47_v24 = vld [vmem:[#allocation5 + $0x20] sm:$0xff]  ;;  %v62_v25 = vld [vmem:[#allocation5 + $0x98] sm:$0xff] }
  0x23   :  { %180 = vmatprep.subr.mxu0 %v70_v8  ;;  %v46_v26 = vld [vmem:[#allocation5 + $0x18] sm:$0xff]  ;;  %v61_v27 = vld [vmem:[#allocation5 + $0x90] sm:$0xff]  ;;  %v60_v29 = vld [vmem:[#allocation5 + $0x88] sm:$0xff] }
  0x24   :  { %181 = vmatpush3.msra.mxu0 %v54_v9  ;;  %v45_v28 = vld [vmem:[#allocation5 + $0x10] sm:$0xff]  ;;  %v44_v30 = vld [vmem:[#allocation5 + $0x8] sm:$0xff]  ;;  %v59_v31 = vld [vmem:[#allocation5 + $0x80] sm:$0xff] }
  0x25   :  { %182 = vmatprep.subr.mxu0 %v69_v10  ;;  %v43_v32 = vld [vmem:[#allocation5] sm:$0xff]  ;;  %v41_v33 = vld [vmem:[#allocation2] sm:$0xff] }
  0x26   :  { %183 = vmatpush3.msra.mxu0 %v53_v11  ;;  %v171_v35 = vld [vmem:[%s319_s2] ss:$0 sm:$0xff] }
  0x27   :  { %184 = vmatprep.subr.mxu0 %v68_v12 }
  0x28   :  { %185 = vmatpush3.msra.mxu0 %v52_v14 }
  0x29   :  { %186 = vmatprep.subr.mxu0 %v67_v15 }
  0x2a   :  { %187 = vmatpush3.msra.mxu0 %v51_v16 }
  0x2b   :  { %188 = vmatprep.subr.mxu0 %v66_v17 }
  0x2c   :  { %189 = vmatpush3.msra.mxu0 %v50_v18 }
  0x2d   :  { %190 = vmatprep.subr.mxu0 %v65_v19 }
  0x2e   :  { %191 = vmatpush3.msra.mxu0 %v49_v20 }
  0x2f   :  { %192 = vmatprep.subr.mxu0 %v64_v21 }
  0x30   :  { %193 = vmatpush3.msra.mxu0 %v48_v22 }
  0x31   :  { %194 = vmatprep.subr.mxu0 %v63_v23 }
  0x32   :  { %195 = vmatpush3.msra.mxu0 %v47_v24 }
  0x33   :  { %196 = vmatprep.subr.mxu0 %v62_v25 }
  0x34   :  { %197 = vmatpush3.msra.mxu0 %v46_v26 }
  0x35   :  { %198 = vmatprep.subr.mxu0 %v61_v27 }
  0x36   :  { %199 = vmatpush3.msra.mxu0 %v45_v28 }
  0x37   :  { %200 = vmatprep.subr.mxu0 %v60_v29 }
  0x38   :  { %201 = vmatpush3.msra.mxu0 %v44_v30 }
  0x39   :  { %202 = vmatprep.subr.mxu0 %v59_v31 }
  0x3a   :  { %203 = vmatpush3.msra.mxu0 %v43_v32 }
  0x3b   :  { %147 = vmatmul.mubr.f32.vlgmr.msra.gmra.mxu0 %v41_v33 }
  0xfb   :  { %v204_v34 = vpop.f32.mrf.mxu0 }
  0xfd   :  { %v205_v36 = vpop.f32.mrf.mxu0 }
  0xfe   :  { %v206_v37 = vadd.f32 %v205_v36, %v204_v34 }
 0x100   :  { %v149_v38 = vadd.f32 %v206_v37, %v171_v35 }
 0x102   :  { %v152_v39 = vmax.f32 %v149_v38, 0.0 }
 0x104   :  { %212 = vtanh.f32 %v152_v39 }
 0x111   :  { %v213_v40 = vpop.eup %212 }
 0x112   :  { %154 = vst [vmem:[#allocation7] sm:$0xff] %v213_v40 }
 0x113   :  { %265 = shalt.err (!%p262_p0)
}
 0x114   :  { %164 = dma.vmem_to_hbm [thread:$0]  %s162_s25, 128, %s320_s3, [#allocation4]  }
 0x115   :  { %278 = dma.done.wait [#allocation4], 128  }
 0x116   :  { %279 = vsyncadd [#allocation4], 4294967168 }
 0x117   :  { %168 = vsyncpa [#allocation3], 1 }
 0x118   :  { %169 = vsyncpa [#allocation6], 1 }
 0x119   :  { %170 = vsyncpa [#allocation4], 1 }

</bundles_post_ra>
